<compile_context>
chip_gen: v5e
topology: v5e:2x2
jax: 0.10.0
libtpu: 0.0.40
codegen_flags: <defaults>
</compile_context>

<pallas_src>
import functools

import jax
import jax.numpy as jnp
from jax.experimental import pallas as pl
from jax.experimental.pallas import tpu as pltpu


def _vmem_limit_bytes():
    """Per-generation scoped-VMEM budget: ~3/4 of physical, capped at 96 MiB."""
    try:
        cap = int(pltpu.get_tpu_info().vmem_capacity_bytes)
    except Exception:
        cap = 64 * 1024 * 1024          # safe fallback (v7x physical size)
    return min((cap * 3) // 4, 96 * 1024 * 1024)


_VMEM_LIMIT = _vmem_limit_bytes()


# ----------------------------------------------------------------------------
# Kernel 1: row-tiled linear  y = x @ w + b  (optionally * row_scale)
#   Used only for value_proj (row_scale = 1 - padding_mask when a mask exists).
#   bf16 operands, f32 accumulation, bf16 output.
# ----------------------------------------------------------------------------
def _linear_kernel(x_ref, w_ref, b_ref, o_ref):
    y = jnp.dot(x_ref[...].astype(jnp.bfloat16), w_ref[...],
                preferred_element_type=jnp.float32)
    o_ref[...] = (y + b_ref[...]).astype(o_ref.dtype)


def _linear_scaled_kernel(x_ref, w_ref, b_ref, s_ref, o_ref):
    y = jnp.dot(x_ref[...].astype(jnp.bfloat16), w_ref[...],
                preferred_element_type=jnp.float32)
    o_ref[...] = ((y + b_ref[...]) * s_ref[...]).astype(o_ref.dtype)


def pallas_linear(x, w, b, *, row_scale=None, out_dtype=jnp.bfloat16, tm=512):
    """Row-tiled (x @ w + b) [* row_scale].  tm is a multiple of 256 for the
    v6e/v7x MXU; the last row tile may be ragged (OOB writes are dropped)."""
    M, K = x.shape
    N = w.shape[1]
    tm = M if M <= tm else tm
    grid = (pl.cdiv(M, tm),)

    in_specs = [
        # TODO(synk): if DMA is exposed on this stream at production M, bump
        # pipeline_mode=pl.Buffered(3) on the x spec.
        pl.BlockSpec((tm, K), lambda i: (i, 0)),
        pl.BlockSpec((K, N), lambda i: (0, 0)),
        pl.BlockSpec((1, N), lambda i: (0, 0)),
    ]
    args = [x, w, b.reshape(1, N)]
    kernel = _linear_kernel
    if row_scale is not None:
        in_specs.append(pl.BlockSpec((tm, 1), lambda i: (i, 0)))
        args.append(row_scale)
        kernel = _linear_scaled_kernel

    return pl.pallas_call(
        kernel,
        out_shape=jax.ShapeDtypeStruct((M, N), out_dtype),
        grid=grid,
        in_specs=in_specs,
        out_specs=pl.BlockSpec((tm, N), lambda i: (i, 0)),
        compiler_params=pltpu.CompilerParams(
            dimension_semantics=("parallel",),
            vmem_limit_bytes=_VMEM_LIMIT),
    )(*args)


# ----------------------------------------------------------------------------
# Kernel 2: fused conv0 (1x1) + conv1 (3x3, pad 1), channels-last, one image
#   per grid step.  y0 is staged into a zero-padded VMEM scratch so the 9 taps
#   are static pl.ds slices; column masks are built in-kernel from iota.
# ----------------------------------------------------------------------------
def _conv_block_kernel(x_ref, w0_ref, b0_ref, w1_ref, b1_ref, o_ref, ypad_ref,
                       *, W):
    HW, C = x_ref.shape
    PAD = W + 1

    # conv0 on the MXU: bf16 operands, f32 accumulation
    y0 = jnp.dot(x_ref[...].astype(jnp.bfloat16), w0_ref[...],
                 preferred_element_type=jnp.float32) + b0_ref[...]

    # stage y0 into the zero-padded scratch (pad rows implement vertical zero-pad)
    zpad = jnp.zeros((PAD, C), jnp.bfloat16)
    ypad_ref[pl.ds(0, PAD), :] = zpad
    ypad_ref[pl.ds(PAD + HW, PAD), :] = zpad
    ypad_ref[pl.ds(PAD, HW), :] = y0.astype(jnp.bfloat16)

    # in-kernel column-validity masks (no HBM traffic, no lane-1 DMA buffers)
    w_idx = jax.lax.broadcasted_iota(jnp.int32, (HW, 1), 0) % W
    left_ok = w_idx >= 1            # reading column w-1 is inside the image
    right_ok = w_idx <= W - 2       # reading column w+1 is inside the image

    acc = jnp.zeros((HW, C), jnp.float32) + b1_ref[...]
    t = 0
    for dh in (-1, 0, 1):
        for dw in (-1, 0, 1):
            s = dh * W + dw                       # static flat-row offset
            tap = ypad_ref[pl.ds(PAD + s, HW), :]  # static slice, no roll
            if dw == -1:
                tap = jnp.where(left_ok, tap, jnp.zeros_like(tap))
            elif dw == 1:
                tap = jnp.where(right_ok, tap, jnp.zeros_like(tap))
            acc = acc + jnp.dot(tap, w1_ref[t],
                                preferred_element_type=jnp.float32)
            t += 1
    o_ref[...] = acc.astype(o_ref.dtype)


def pallas_conv_block(x_cl, H, W, aa):
    """conv0 (1x1) + conv1 (3x3, pad 1) on channels-last rows, one image/step.

    TODO(synk): for very large H*W per image, further tile rows within each
    image with a +/-W-row halo (manual DMA) instead of one image per step.
    """
    B, HW, C = x_cl.shape
    PAD = W + 1
    kern = functools.partial(_conv_block_kernel, W=W)
    return pl.pallas_call(
        kern,
        out_shape=jax.ShapeDtypeStruct((B, HW, C), jnp.bfloat16),
        grid=(B,),
        in_specs=[
            pl.BlockSpec((None, HW, C), lambda b: (b, 0, 0)),
            pl.BlockSpec((C, C), lambda b: (0, 0)),
            pl.BlockSpec((1, C), lambda b: (0, 0)),
            pl.BlockSpec((9, C, C), lambda b: (0, 0, 0)),
            pl.BlockSpec((1, C), lambda b: (0, 0)),
        ],
        out_specs=pl.BlockSpec((None, HW, C), lambda b: (b, 0, 0)),
        scratch_shapes=[pltpu.VMEM((HW + 2 * PAD, C), jnp.bfloat16)],
        compiler_params=pltpu.CompilerParams(
            dimension_semantics=("parallel",),
            vmem_limit_bytes=_VMEM_LIMIT),
    )(x_cl, aa['conv0_w'], aa['conv0_b'].reshape(1, C),
      aa['conv1_w9'], aa['conv1_b'].reshape(1, C))


# ----------------------------------------------------------------------------
# Kernel 3: fused q|k|v 1x1 projections in NCHW orientation (one matmul, three
#   outputs), grid over (batch, spatial-lane tiles), both "parallel".
# ----------------------------------------------------------------------------
def _qkv_proj_kernel(x_ref, w_ref, b_ref, q_ref, k_ref, v_ref, *, Cq):
    xb = x_ref[...].astype(jnp.bfloat16)                    # (C, THW)
    y = jnp.dot(w_ref[...], xb,
                preferred_element_type=jnp.float32) + b_ref[...]   # (Ctot, THW)
    q_ref[...] = y[:Cq].astype(q_ref.dtype)
    k_ref[...] = y[Cq:2 * Cq].astype(k_ref.dtype)
    v_ref[...] = y[2 * Cq:].astype(v_ref.dtype)


def pallas_qkv_proj(x_nchw_flat, wqkv, bqkv, Cq, *, thw_pref=2048):
    B, C, HW = x_nchw_flat.shape
    Ctot = wqkv.shape[0]
    thw = HW if HW <= thw_pref else (thw_pref // 128) * 128
    grid = (B, pl.cdiv(HW, thw))
    kern = functools.partial(_qkv_proj_kernel, Cq=Cq)
    return pl.pallas_call(
        kern,
        out_shape=(jax.ShapeDtypeStruct((B, Cq, HW), jnp.bfloat16),
                   jax.ShapeDtypeStruct((B, Cq, HW), jnp.bfloat16),
                   jax.ShapeDtypeStruct((B, C, HW), jnp.bfloat16)),
        grid=grid,
        in_specs=[
            pl.BlockSpec((None, C, thw), lambda b, j: (b, 0, j)),
            pl.BlockSpec((Ctot, C), lambda b, j: (0, 0)),
            pl.BlockSpec((Ctot, 1), lambda b, j: (0, 0)),
        ],
        out_specs=(pl.BlockSpec((None, Cq, thw), lambda b, j: (b, 0, j)),
                   pl.BlockSpec((None, Cq, thw), lambda b, j: (b, 0, j)),
                   pl.BlockSpec((None, C, thw), lambda b, j: (b, 0, j))),
        compiler_params=pltpu.CompilerParams(
            dimension_semantics=("parallel", "parallel"),
            vmem_limit_bytes=_VMEM_LIMIT),
    )(x_nchw_flat, wqkv, bqkv.reshape(Ctot, 1))


# ----------------------------------------------------------------------------
# Kernel 4: axial sigmoid attention + gamma * out + residual, on the raw
#   (B, M, A) views.  attT = sigmoid(Q^T K)^T is computed once per batch into a
#   VMEM scratch and reused across the M-row tiles.
# ----------------------------------------------------------------------------
def _axis_attn_kernel(q_ref, k_ref, v_ref, x_ref, gamma_ref, o_ref, attT_ref):
    @pl.when(pl.program_id(1) == 0)
    def _():
        # attT[c, a] = sigmoid( sum_j K[j, c] * Q[j, a] )
        s = jax.lax.dot_general(
            k_ref[...], q_ref[...],
            dimension_numbers=(((0,), (0,)), ((), ())),
            preferred_element_type=jnp.float32)              # (A, A)
        attT_ref[...] = jax.nn.sigmoid(s)

    out = jnp.dot(v_ref[...], attT_ref[...].astype(jnp.bfloat16),
                  preferred_element_type=jnp.float32)         # (TMv, A)
    o_ref[...] = (gamma_ref[0] * out
                  + x_ref[...].astype(jnp.float32)).astype(o_ref.dtype)


def pallas_axis_attn(q3, k3, v3, x3, gamma, *, tmv_pref=1024):
    B, Mq, A = q3.shape
    Mv = v3.shape[1]
    tmv = Mv if Mv <= tmv_pref else (tmv_pref // 8) * 8
    grid = (B, pl.cdiv(Mv, tmv))
    return pl.pallas_call(
        _axis_attn_kernel,
        out_shape=jax.ShapeDtypeStruct((B, Mv, A), jnp.float32),
        grid=grid,
        in_specs=[
            pl.BlockSpec((None, Mq, A), lambda b, j: (b, 0, 0)),
            pl.BlockSpec((None, Mq, A), lambda b, j: (b, 0, 0)),
            pl.BlockSpec((None, tmv, A), lambda b, j: (b, j, 0)),
            pl.BlockSpec((None, tmv, A), lambda b, j: (b, j, 0)),
            pl.BlockSpec(memory_space=pltpu.MemorySpace.SMEM),
        ],
        out_specs=pl.BlockSpec((None, tmv, A), lambda b, j: (b, j, 0)),
        scratch_shapes=[pltpu.VMEM((A, A), jnp.float32)],
        compiler_params=pltpu.CompilerParams(
            dimension_semantics=("parallel", "arbitrary"),
            vmem_limit_bytes=_VMEM_LIMIT),
    )(q3, k3, v3, x3, gamma)


# ----------------------------------------------------------------------------
# Module forward (wrapper glue; raw torch `.view(B, -1, axis)` == contiguous
# row-major reshape of NCHW data, i.e. free in XLA)
# ----------------------------------------------------------------------------
def self_attn1_forward(x_nchw, p, mode):
    B, C, H, W = x_nchw.shape
    HW = H * W
    A = 1
    if 'h' in mode:
        A *= H
    if 'w' in mode:
        A *= W
    Cq = C // 8
    Mq = (Cq * HW) // A
    Mv = (C * HW) // A

    x_flat = x_nchw.reshape(B, C, HW)
    q, k, v = pallas_qkv_proj(x_flat, p['wqkv'], p['bqkv'], Cq)

    # torch .view(B, -1, A) of the NCHW conv outputs -> free contiguous reshapes
    q3 = q.reshape(B, Mq, A)
    k3 = k.reshape(B, Mq, A)
    v3 = v.reshape(B, Mv, A)
    x3 = x_flat.reshape(B, Mv, A)

    out3 = pallas_axis_attn(q3, k3, v3, x3, p['gamma'])       # (B, Mv, A) f32
    return out3.reshape(B, C, H, W)


def aa_kernel_forward(lvl_cl, H, W, aa):
    N, HW, C = lvl_cl.shape
    y_cl = pallas_conv_block(lvl_cl, H, W, aa)                 # (N, HW, C) bf16
    # channels-last -> NCHW (mirrors torch's .transpose(1,2).contiguous())
    y_nchw = jnp.transpose(y_cl, (0, 2, 1)).reshape(N, C, H, W)
    hx = self_attn1_forward(y_nchw, aa['hattn'], 'h')          # (N, C, H, W) f32
    wx = self_attn1_forward(hx, aa['wattn'], 'w')              # (N, C, H, W) f32
    return wx


def axial_attention_forward(params, input_flatten, input_spatial_shapes,
                            input_level_start_index, input_padding_mask):
    N, Len_in, C = input_flatten.shape
    assert sum(h * w for h, w in input_spatial_shapes) == Len_in, \
        'The sum of spatial shapes must match the length of the input sequence.'

    # value_proj with the padding-mask zeroing fused into the tiled matmul
    keep = None
    if input_padding_mask is not None:
        keep = (1.0 - input_padding_mask.astype(jnp.float32)).reshape(N * Len_in, 1)
    value = pallas_linear(input_flatten.reshape(N * Len_in, C),
                          params['vp_w'], params['vp_b'],
                          row_scale=keep,
                          out_dtype=jnp.bfloat16).reshape(N, Len_in, C)

    outs = []
    for level, (H_l, W_l) in enumerate(input_spatial_shapes):
        start = input_level_start_index[level]
        lvl_cl = value[:, start:start + H_l * W_l]             # (N, HW, C) bf16
        wx = aa_kernel_forward(lvl_cl, H_l, W_l, params['aa'])  # (N, C, H, W)
        # NCHW -> (N, HW, C) (mirrors torch's .flatten(2).transpose(1,2))
        outs.append(jnp.transpose(wx.reshape(N, C, H_l * W_l), (0, 2, 1)))
    return jnp.concatenate(outs, axis=1)


# ----------------------------------------------------------------------------
# Deterministic parameter init (shapes per the module __init__; synthetic)
# ----------------------------------------------------------------------------
def init_params(key, C):
    ks = jax.random.split(key, 10)
    s = 0.05
    Cq = C // 8

    def rn(k, shape, dtype=jnp.float32):
        return (jax.random.normal(k, shape, jnp.float32) * s).astype(dtype)

    def attn_p(k1, k2):
        # separate query/key/value 1x1 convs stored fused (concatenated along
        # output channels) so a single NCHW matmul produces q|k|v.
        return {
            'wqkv': rn(k1, (2 * Cq + C, C), jnp.bfloat16),
            'bqkv': rn(k2, (2 * Cq + C,)),
            'gamma': jnp.zeros((1,), jnp.float32),   # torch: nn.Parameter(zeros(1))
        }

    return {
        'vp_w': rn(ks[0], (C, C), jnp.bfloat16),
        'vp_b': rn(ks[1], (C,)),
        'aa': {
            'conv0_w': rn(ks[2], (C, C), jnp.bfloat16),
            'conv0_b': rn(ks[3], (C,)),
            # (kh, kw, Cin, Cout) -> (9, Cin, Cout), tap t == (dh+1)*3 + (dw+1)
            'conv1_w9': rn(ks[4], (3, 3, C, C), jnp.bfloat16).reshape(9, C, C),
            'conv1_b': rn(ks[5], (C,)),
            'hattn': attn_p(ks[6], ks[7]),
            'wattn': attn_p(ks[8], ks[9]),
        },
    }


if __name__ == "__main__":
    C = 32   # stands in for channels=256 (the hard-coded 256 in the torch forward)
    N = 2
    spatial_shapes = [(8, 8), (4, 4)]             # static per-level (H, W)
    Len_in = sum(h * w for h, w in spatial_shapes)
    level_start_index = [0]
    for h, w in spatial_shapes[:-1]:
        level_start_index.append(level_start_index[-1] + h * w)

    key = jax.random.PRNGKey(0)
    kx, kmask, kp = jax.random.split(key, 3)
    input_flatten = jax.random.normal(kx, (N, Len_in, C), jnp.float32)
    input_padding_mask = jax.random.bernoulli(kmask, 0.1, (N, Len_in))
    params = init_params(kp, C)

    out = axial_attention_forward(params, input_flatten, spatial_shapes,
                                  level_start_index, input_padding_mask)
    out = jax.block_until_ready(out)
    assert out.shape == (N, Len_in, C), out.shape
    assert bool(jnp.all(jnp.isfinite(out)))
    print("KERNEL_OK")
</pallas_src>

<mosaic_0001>
module attributes {stable_mosaic.version = 11 : i64} {
  func.func @_linear_scaled_kernel(%arg0: i32, %arg1: memref<160x32xf32, #tpu.memory_space<vmem>>, %arg2: memref<32x32xbf16, #tpu.memory_space<vmem>>, %arg3: memref<1x32xf32, #tpu.memory_space<vmem>>, %arg4: memref<160x1xf32, #tpu.memory_space<vmem>>, %arg5: memref<160x32xbf16, #tpu.memory_space<vmem>>) attributes {dimension_semantics = [#tpu.dimension_semantics<parallel>], iteration_bounds = array<i64: 1>, scalar_prefetch = 0 : i64, scratch_operands = 0 : i64, tpu.core_type = #tpu.core_type<tc>, window_params = [{transform_indices = @transform_0, window_bounds = array<i64: 160, 32>}, {pipeline_mode = #tpu.pipeline_mode<synchronous>, transform_indices = @transform_1, window_bounds = array<i64: 32, 32>}, {pipeline_mode = #tpu.pipeline_mode<synchronous>, transform_indices = @transform_2, window_bounds = array<i64: 1, 32>}, {transform_indices = @transform_3, window_bounds = array<i64: 160, 1>}, {transform_indices = @transform_4, window_bounds = array<i64: 160, 32>}]} {
    %c0 = arith.constant 0 : index
    %c0_0 = arith.constant 0 : index
    %0 = vector.load %arg1[%c0, %c0_0] : memref<160x32xf32, #tpu.memory_space<vmem>>, vector<160x32xf32>
    %1 = arith.truncf %0 : vector<160x32xf32> to vector<160x32xbf16>
    %c0_1 = arith.constant 0 : index
    %c0_2 = arith.constant 0 : index
    %2 = vector.load %arg2[%c0_1, %c0_2] : memref<32x32xbf16, #tpu.memory_space<vmem>>, vector<32x32xbf16>
    %cst = arith.constant dense<0.000000e+00> : vector<160x32xf32>
    %3 = tpu.matmul %1, %2, %cst {dimension_numbers = #tpu.dot_dimension_numbers<[1], [0], [0], [1], [0, 0, 1, 1], [], []>} : vector<160x32xbf16>, vector<32x32xbf16>, vector<160x32xf32> -> vector<160x32xf32>
    %c0_3 = arith.constant 0 : index
    %c0_4 = arith.constant 0 : index
    %4 = vector.load %arg3[%c0_3, %c0_4] : memref<1x32xf32, #tpu.memory_space<vmem>>, vector<1x32xf32>
    %5 = vector.broadcast %4 : vector<1x32xf32> to vector<160x32xf32>
    %6 = arith.addf %3, %5 : vector<160x32xf32>
    %c0_5 = arith.constant 0 : index
    %c0_6 = arith.constant 0 : index
    %7 = vector.load %arg4[%c0_5, %c0_6] : memref<160x1xf32, #tpu.memory_space<vmem>>, vector<160x1xf32>
    %8 = vector.broadcast %7 : vector<160x1xf32> to vector<160x32xf32>
    %9 = arith.mulf %6, %8 : vector<160x32xf32>
    %10 = arith.truncf %9 : vector<160x32xf32> to vector<160x32xbf16>
    %c0_7 = arith.constant 0 : index
    %c0_8 = arith.constant 0 : index
    %11 = vector.load %arg5[%c0_7, %c0_8] : memref<160x32xbf16, #tpu.memory_space<vmem>>, vector<160x32xbf16>
    tpu.vector_store %arg5[%c0_7, %c0_8], %10 {strides = array<i32>} : memref<160x32xbf16, #tpu.memory_space<vmem>>, vector<160x32xbf16>,
    return
  }
  func.func @transform_0(%arg0: i32) -> (i32, i32) {
    %c0_i32 = arith.constant 0 : i32
    %c0_i32_0 = arith.constant 0 : i32
    return %arg0, %c0_i32 : i32, i32
  }
  func.func @transform_1(%arg0: i32) -> (i32, i32) {
    %c0_i32 = arith.constant 0 : i32
    %c0_i32_0 = arith.constant 0 : i32
    %c0_i32_1 = arith.constant 0 : i32
    return %c0_i32, %c0_i32_0 : i32, i32
  }
  func.func @transform_2(%arg0: i32) -> (i32, i32) {
    %c0_i32 = arith.constant 0 : i32
    %c0_i32_0 = arith.constant 0 : i32
    %c0_i32_1 = arith.constant 0 : i32
    return %c0_i32, %c0_i32_0 : i32, i32
  }
  func.func @transform_3(%arg0: i32) -> (i32, i32) {
    %c0_i32 = arith.constant 0 : i32
    %c0_i32_0 = arith.constant 0 : i32
    return %arg0, %c0_i32 : i32, i32
  }
  func.func @transform_4(%arg0: i32) -> (i32, i32) {
    %c0_i32 = arith.constant 0 : i32
    %c0_i32_0 = arith.constant 0 : i32
    return %arg0, %c0_i32 : i32, i32
  }
}

</mosaic_0001>

<bundles_post_ra>
// kernel: tpu_custom_call.1
= control target key start
LH: loop header
LB: loop body
LE: loop exit
PB: predicated region body
PF: predicated region fallthrough
CT: control target
= control target key end

     0   :  { %v374_v0 = vmov 0   ;;  %vm68_vm0 = vcmask 261120   ;;  %vm318_vm1 = vcmask 257024   ;;  %s656_s3 = inlined_call_operand.vmem [shape: f32[160,1], index: 3, kind: input, shape index: {}]   ;;  %s657_s1 = inlined_call_operand.vmem [shape: bf16[32,32], index: 1, kind: input, shape index: {}]   ;;  %s658_s0 = inlined_call_operand.vmem [shape: f32[160,32], index: 0, kind: input, shape index: {}]   ;;  %s659_s2 = inlined_call_operand.vmem [shape: f32[1,32], index: 2, kind: input, shape index: {}]   ;;  %s660_s4 = inlined_call_operand.vmem [shape: bf16[160,32], index: 4, kind: output, shape index: {}]  }
   0x1   :  { %371 = vset.pattern.permute.xlu1 %v374_v0  ;;  %370 = vset.pattern.permute.xlu0 %v374_v0  ;;  %v160_v1 = vld [vmem:[%s656_s3 + $0x10] sm:$0xff]  ;;  %v158_v2 = vld [vmem:[%s656_s3] sm:$0xff]  ;;  %v362_v3 = vld [vmem:[%s657_s1 + $0x8] sm:$0xff] }
   0x2   :  { %190 = vperm.xlu1 %371, %v160_v1   ;;  %180 = vperm.xlu0 %370, %v158_v2   ;;  %v361_v4 = vld [vmem:[%s657_s1] sm:$0xff]  ;;  %v19_v6 = vld [vmem:[%s658_s0 + $0x8] sm:$0xff]  ;;  %v24_v7 = vld [vmem:[%s658_s0 + $0x30] sm:$0xff] }
   0x3   :  { %105 = vmatpush.bf16.msra.mxu0 %v362_v3  ;;  %363 = vmatpush.bf16.msra.mxu1 %v362_v3  ;;  %v18_v5 = vld [vmem:[%s658_s0] sm:$0xff]  ;;  %v25_v8 = vld [vmem:[%s658_s0 + $0x38] sm:$0xff]  ;;  %v31_v10 = vld [vmem:[%s658_s0 + $0x68] sm:$0xff] }
   0x4   :  { %364 = vmatpush.bf16.msra.mxu2 %v362_v3  ;;  %365 = vmatpush.bf16.msra.mxu3 %v362_v3  ;;  %v30_v9 = vld [vmem:[%s658_s0 + $0x60] sm:$0xff]  ;;  %v32_v11 = vld [vmem:[%s658_s0 + $0x70] sm:$0xff]  ;;  %v33_v12 = vld [vmem:[%s658_s0 + $0x78] sm:$0xff]  ;;  %v38_v16 = vpack.c.bf16 %v19_v6, %v18_v5  ;;  %v41_v17 = vpack.c.bf16 %v25_v8, %v24_v7 }
   0x5   :  { %372 = vset.pattern.permute.xlu2 %v374_v0  ;;  %v162_v13 = vld [vmem:[%s656_s3 + $0x20] sm:$0xff]  ;;  %v161_v14 = vld [vmem:[%s656_s3 + $0x18] sm:$0xff]  ;;  %v159_v15 = vld [vmem:[%s656_s3 + $0x8] sm:$0xff]  ;;  %v44_v18 = vpack.c.bf16 %v31_v10, %v30_v9  ;;  %v45_v19 = vpack.c.bf16 %v33_v12, %v32_v11 }
   0x6   :  { %200 = vperm.xlu2 %372, %v162_v13   ;;  %v163_v20 = vld [vmem:[%s656_s3 + $0x28] sm:$0xff]  ;;  %v165_v21 = vld [vmem:[%s656_s3 + $0x38] sm:$0xff]  ;;  %v164_v22 = vld [vmem:[%s656_s3 + $0x30] sm:$0xff] }
   0x7   :  { %106 = vmatpush.bf16.msra.mxu0 %v361_v4  ;;  %366 = vmatpush.bf16.msra.mxu1 %v361_v4  ;;  %v20_v23 = vld [vmem:[%s658_s0 + $0x10] sm:$0xff]  ;;  %v166_v24 = vld [vmem:[%s656_s3 + $0x40] sm:$0xff]  ;;  %v21_v25 = vld [vmem:[%s658_s0 + $0x18] sm:$0xff] }
   0x8   :  { %367 = vmatpush.bf16.msra.mxu2 %v361_v4  ;;  %368 = vmatpush.bf16.msra.mxu3 %v361_v4  ;;  %v26_v26 = vld [vmem:[%s658_s0 + $0x40] sm:$0xff]  ;;  %v27_v27 = vld [vmem:[%s658_s0 + $0x48] sm:$0xff]  ;;  %v168_v30 = vld [vmem:[%s656_s3 + $0x50] sm:$0xff]  ;;  %v39_v32 = vpack.c.bf16 %v21_v25, %v20_v23 }
   0x9   :  { %v34_v28 = vld [vmem:[%s658_s0 + $0x80] sm:$0xff]  ;;  %v35_v29 = vld [vmem:[%s658_s0 + $0x88] sm:$0xff]  ;;  %v42_v33 = vpack.c.bf16 %v27_v27, %v26_v26  ;;  %v169_v35 = vld [vmem:[%s656_s3 + $0x58] sm:$0xff] }
   0xa   :  { %195 = vperm.xlu1 %371, %v161_v14   ;;  %185 = vperm.xlu0 %370, %v159_v15   ;;  %v167_v31 = vld [vmem:[%s656_s3 + $0x48] sm:$0xff]  ;;  %v46_v34 = vpack.c.bf16 %v35_v29, %v34_v28  ;;  %v170_v37 = vld [vmem:[%s656_s3 + $0x60] sm:$0xff]  ;;  %v172_v39 = vld [vmem:[%s656_s3 + $0x70] sm:$0xff] }
   0xb   :  { %351 = vmatmul.msk.bf16.vlgmr.msra.gmra.mxu0 %vm68_vm0, %v38_v16  ;;  %354 = vmatmul.msk.bf16.vlgmr.msra.gmra.mxu1 %vm68_vm0, %v41_v17  ;;  %v171_v36 = vld [vmem:[%s656_s3 + $0x68] sm:$0xff]  ;;  %v22_v38 = vld [vmem:[%s658_s0 + $0x20] sm:$0xff]  ;;  %v28_v41 = vld [vmem:[%s658_s0 + $0x50] sm:$0xff] }
   0xc   :  { %357 = vmatmul.msk.bf16.vlgmr.msra.gmra.mxu2 %vm68_vm0, %v44_v18  ;;  %358 = vmatmul.msk.bf16.vlgmr.msra.gmra.mxu3 %vm68_vm0, %v45_v19  ;;  %v23_v40 = vld [vmem:[%s658_s0 + $0x28] sm:$0xff]  ;;  %v29_v42 = vld [vmem:[%s658_s0 + $0x58] sm:$0xff]  ;;  %v36_v43 = vld [vmem:[%s658_s0 + $0x90] sm:$0xff] }
   0xd   :  { %v37_v44 = vld [vmem:[%s658_s0 + $0x98] sm:$0xff]  ;;  %v174_v45 = vld [vmem:[%s656_s3 + $0x80] sm:$0xff]  ;;  %v40_v47 = vpack.c.bf16 %v23_v40, %v22_v38  ;;  %v43_v48 = vpack.c.bf16 %v29_v42, %v28_v41  ;;  %v175_v50 = vld [vmem:[%s656_s3 + $0x88] sm:$0xff] }
   0xe   :  { %205 = vperm.xlu2 %372, %v163_v20   ;;  %v173_v46 = vld [vmem:[%s656_s3 + $0x78] sm:$0xff]  ;;  %v47_v49 = vpack.c.bf16 %v37_v44, %v36_v43  ;;  %v176_v52 = vld [vmem:[%s656_s3 + $0x90] sm:$0xff]  ;;  %v545_v62 = vld [vmem:[%s659_s2] ss:$0 sm:$0xff] }
   0xf   :  { %v177_v51 = vld [vmem:[%s656_s3 + $0x98] sm:$0xff] }
  0x12   :  { %215 = vperm.xlu1 %371, %v165_v21   ;;  %210 = vperm.xlu0 %370, %v164_v22  }
  0x16   :  { %220 = vperm.xlu2 %372, %v166_v24  }
  0x1a   :  { %230 = vperm.xlu1 %371, %v168_v30   ;;  %225 = vperm.xlu0 %370, %v167_v31  }
  0x1b   :  { %352 = vmatmul.msk.bf16.gmra.mxu0 %vm68_vm0, %v39_v32  ;;  %355 = vmatmul.msk.bf16.gmra.mxu1 %vm68_vm0, %v42_v33 }
  0x1c   :  { %359 = vmatmul.msk.bf16.gmra.mxu3 %vm68_vm0, %v46_v34 }
  0x1e   :  { %235 = vperm.xlu2 %372, %v169_v35  }
  0x22   :  { %245 = vperm.xlu1 %371, %v171_v36   ;;  %240 = vperm.xlu0 %370, %v170_v37  }
  0x26   :  { %250 = vperm.xlu2 %372, %v172_v39  }
  0x2a   :  { %260 = vperm.xlu1 %371, %v174_v45   ;;  %255 = vperm.xlu0 %370, %v173_v46  }
  0x2b   :  { %353 = vmatmul.msk.bf16.gmra.mxu0 %vm68_vm0, %v40_v47  ;;  %356 = vmatmul.msk.bf16.gmra.mxu1 %vm68_vm0, %v43_v48 }
  0x2c   :  { %360 = vmatmul.msk.bf16.gmra.mxu3 %vm68_vm0, %v47_v49 }
  0x2e   :  { %265 = vperm.xlu2 %372, %v175_v50  }
  0x32   :  { %275 = vperm.xlu1 %371, %v177_v51   ;;  %270 = vperm.xlu0 %370, %v176_v52  }
  0x60   :  { %v536_v53 = vpop.permute.xlu2 %200 }
  0x68   :  { %v538_v54 = vpop.permute.xlu2 %205 }
  0x70   :  { %v221_v59 = vpop.permute.xlu2 %220 }
  0x74   :  { %v191_v55 = vpop.permute.xlu1 %190  ;;  %v181_v56 = vpop.permute.xlu0 %180 }
  0x78   :  { %v547_v63 = vpop.permute.xlu2 %235 }
  0x7c   :  { %v540_v57 = vpop.permute.xlu1 %195  ;;  %v186_v58 = vpop.permute.xlu0 %185 }
  0x80   :  { %v251_v15 = vpop.permute.xlu2 %250 }
  0x84   :  { %v216_v60 = vpop.permute.xlu1 %215  ;;  %v211_v61 = vpop.permute.xlu0 %210 }
  0x88   :  { %v108_v0 = vpop.f32.mrf.mxu0  ;;  %v123_v1 = vpop.f32.mrf.mxu1 }
  0x89   :  { %v109_v2 = vadd.f32 %v545_v62, %v108_v0  ;;  %v124_v3 = vadd.f32 %v545_v62, %v123_v1 }
  0x8b   :  { %v278_v4 = vmul.f32 %v181_v56, %v109_v2  ;;  %v284_v5 = vmul.f32 %v211_v61, %v124_v3  ;;  %v266_v3 = vpop.permute.xlu2 %265 }
  0x8c   :  { %v551_v6 = vpop.permute.xlu1 %230  ;;  %v226_v7 = vpop.permute.xlu0 %225 }
  0x8d   :  { %v298_v8 = vpack.c.bf16 %v278_v4, %v278_v4  ;;  %v304_v9 = vpack.c.bf16 %v284_v5, %v284_v5 }
  0x8f   :  { %319 = vst.msk [vmem:[%s660_s4] sm:$0xf] %vm318_vm1, %v298_v8  ;;  %v138_v10 = vpop.f32.mrf.mxu2  ;;  %v143_v11 = vpop.f32.mrf.mxu3 }
  0x90   :  { %325 = vst.msk [vmem:[%s660_s4 + $0x18] sm:$0xf] %vm318_vm1, %v304_v9  ;;  %v144_v12 = vadd.f32 %v545_v62, %v143_v11  ;;  %v110_v13 = vpop.f32.mrf.mxu0  ;;  %v125_v14 = vpop.f32.mrf.mxu1  ;;  %v139_v16 = vadd.f32 %v545_v62, %v138_v10 }
  0x91   :  { %v111_v17 = vadd.f32 %v545_v62, %v110_v13  ;;  %v126_v18 = vadd.f32 %v545_v62, %v125_v14 }
  0x92   :  { %v292_v19 = vmul.f32 %v251_v15, %v144_v12 }
  0x93   :  { %v279_v20 = vmul.f32 %v186_v58, %v111_v17  ;;  %v285_v21 = vmul.f32 %v216_v60, %v126_v18 }
  0x94   :  { %v312_v22 = vpack.c.bf16 %v292_v19, %v292_v19  ;;  %v241_v23 = vpop.permute.xlu0 %240  ;;  %v246_v27 = vpop.permute.xlu1 %245 }
  0x95   :  { %v299_v24 = vpack.c.bf16 %v279_v20, %v279_v20  ;;  %v305_v25 = vpack.c.bf16 %v285_v21, %v285_v21  ;;  %v290_v26 = vmul.f32 %v241_v23, %v139_v16 }
  0x96   :  { %333 = vst.msk [vmem:[%s660_s4 + $0x38] sm:$0xf] %vm318_vm1, %v312_v22 }
  0x97   :  { %320 = vst.msk [vmem:[%s660_s4 + $0x4] sm:$0xf] %vm318_vm1, %v299_v24  ;;  %v310_v28 = vpack.c.bf16 %v290_v26, %v290_v26  ;;  %v140_v29 = vpop.f32.mrf.mxu2  ;;  %v145_v30 = vpop.f32.mrf.mxu3 }
  0x98   :  { %326 = vst.msk [vmem:[%s660_s4 + $0x1c] sm:$0xf] %vm318_vm1, %v305_v25  ;;  %v141_v31 = vadd.f32 %v545_v62, %v140_v29  ;;  %v113_v32 = vpop.f32.mrf.mxu0  ;;  %v128_v33 = vpop.f32.mrf.mxu1  ;;  %v146_v37 = vadd.f32 %v545_v62, %v145_v30 }
  0x99   :  { %331 = vst.msk [vmem:[%s660_s4 + $0x30] sm:$0xf] %vm318_vm1, %v310_v28  ;;  %v114_v34 = vadd.f32 %v545_v62, %v113_v32  ;;  %v129_v35 = vadd.f32 %v545_v62, %v128_v33 }
  0x9a   :  { %v291_v36 = vmul.f32 %v246_v27, %v141_v31 }
  0x9b   :  { %v280_v38 = vmul.f32 %v191_v55, %v114_v34  ;;  %v286_v39 = vmul.f32 %v221_v59, %v129_v35 }
  0x9c   :  { %v311_v40 = vpack.c.bf16 %v291_v36, %v291_v36  ;;  %v256_v41 = vpop.permute.xlu0 %255  ;;  %v261_v50 = vpop.permute.xlu1 %260 }
  0x9d   :  { %v300_v42 = vpack.c.bf16 %v280_v38, %v280_v38  ;;  %v306_v43 = vpack.c.bf16 %v286_v39, %v286_v39  ;;  %v293_v44 = vmul.f32 %v256_v41, %v146_v37 }
  0x9e   :  { %332 = vst.msk [vmem:[%s660_s4 + $0x34] sm:$0xf] %vm318_vm1, %v311_v40 }
  0x9f   :  { %321 = vst.msk [vmem:[%s660_s4 + $0x8] sm:$0xf] %vm318_vm1, %v300_v42  ;;  %v313_v45 = vpack.c.bf16 %v293_v44, %v293_v44  ;;  %v148_v46 = vpop.f32.mrf.mxu3 }
  0xa0   :  { %327 = vst.msk [vmem:[%s660_s4 + $0x20] sm:$0xf] %vm318_vm1, %v306_v43  ;;  %v149_v47 = vadd.f32 %v545_v62, %v148_v46  ;;  %v115_v48 = vpop.f32.mrf.mxu0  ;;  %v130_v49 = vpop.f32.mrf.mxu1 }
  0xa1   :  { %334 = vst.msk [vmem:[%s660_s4 + $0x3c] sm:$0xf] %vm318_vm1, %v313_v45  ;;  %v116_v51 = vadd.f32 %v545_v62, %v115_v48  ;;  %v131_v52 = vadd.f32 %v545_v62, %v130_v49 }
  0xa2   :  { %v294_v55 = vmul.f32 %v261_v50, %v149_v47 }
  0xa3   :  { %v281_v56 = vmul.f32 %v540_v57, %v116_v51  ;;  %v287_v58 = vmul.f32 %v226_v7, %v131_v52 }
  0xa4   :  { %v314_v59 = vpack.c.bf16 %v294_v55, %v294_v55  ;;  %v271_v15 = vpop.permute.xlu0 %270 }
  0xa5   :  { %v301_v60 = vpack.c.bf16 %v281_v56, %v281_v56  ;;  %v307_v61 = vpack.c.bf16 %v287_v58, %v287_v58 }
  0xa6   :  { %335 = vst.msk [vmem:[%s660_s4 + $0x40] sm:$0xf] %vm318_vm1, %v314_v59 }
  0xa7   :  { %322 = vst.msk [vmem:[%s660_s4 + $0xc] sm:$0xf] %vm318_vm1, %v301_v60  ;;  %v150_v0 = vpop.f32.mrf.mxu3 }
  0xa8   :  { %328 = vst.msk [vmem:[%s660_s4 + $0x24] sm:$0xf] %vm318_vm1, %v307_v61  ;;  %v151_v57 = vadd.f32 %v545_v62, %v150_v0  ;;  %v118_v1 = vpop.f32.mrf.mxu0  ;;  %v133_v2 = vpop.f32.mrf.mxu1 }
  0xa9   :  { %v119_v4 = vadd.f32 %v545_v62, %v118_v1  ;;  %v134_v5 = vadd.f32 %v545_v62, %v133_v2 }
  0xaa   :  { %v295_v7 = vmul.f32 %v266_v3, %v151_v57 }
  0xab   :  { %v282_v8 = vmul.f32 %v536_v53, %v119_v4  ;;  %v288_v9 = vmul.f32 %v551_v6, %v134_v5 }
  0xac   :  { %v315_v10 = vpack.c.bf16 %v295_v7, %v295_v7 }
  0xad   :  { %v302_v11 = vpack.c.bf16 %v282_v8, %v282_v8  ;;  %v308_v12 = vpack.c.bf16 %v288_v9, %v288_v9 }
  0xae   :  { %336 = vst.msk [vmem:[%s660_s4 + $0x44] sm:$0xf] %vm318_vm1, %v315_v10 }
  0xaf   :  { %323 = vst.msk [vmem:[%s660_s4 + $0x10] sm:$0xf] %vm318_vm1, %v302_v11  ;;  %v153_v13 = vpop.f32.mrf.mxu3 }
  0xb0   :  { %329 = vst.msk [vmem:[%s660_s4 + $0x28] sm:$0xf] %vm318_vm1, %v308_v12  ;;  %v154_v53 = vadd.f32 %v545_v62, %v153_v13  ;;  %v120_v6 = vpop.f32.mrf.mxu0  ;;  %v135_v14 = vpop.f32.mrf.mxu1 }
  0xb1   :  { %v121_v16 = vadd.f32 %v545_v62, %v120_v6  ;;  %v136_v17 = vadd.f32 %v545_v62, %v135_v14 }
  0xb2   :  { %v296_v18 = vmul.f32 %v271_v15, %v154_v53 }
  0xb3   :  { %v283_v19 = vmul.f32 %v538_v54, %v121_v16  ;;  %v289_v20 = vmul.f32 %v547_v63, %v136_v17  ;;  %v276_v63 = vpop.permute.xlu1 %275 }
  0xb4   :  { %v316_v21 = vpack.c.bf16 %v296_v18, %v296_v18 }
  0xb5   :  { %v303_v22 = vpack.c.bf16 %v283_v19, %v283_v19  ;;  %v309_v23 = vpack.c.bf16 %v289_v20, %v289_v20 }
  0xb6   :  { %337 = vst.msk [vmem:[%s660_s4 + $0x48] sm:$0xf] %vm318_vm1, %v316_v21 }
  0xb7   :  { %324 = vst.msk [vmem:[%s660_s4 + $0x14] sm:$0xf] %vm318_vm1, %v303_v22  ;;  %v155_v24 = vpop.f32.mrf.mxu3 }
  0xb8   :  { %330 = vst.msk [vmem:[%s660_s4 + $0x2c] sm:$0xf] %vm318_vm1, %v309_v23  ;;  %v156_v54 = vadd.f32 %v545_v62, %v155_v24 }
  0xba   :  { %v297_v25 = vmul.f32 %v276_v63, %v156_v54 }
  0xbc   :  { %v317_v26 = vpack.c.bf16 %v297_v25, %v297_v25 }
  0xbe   :  { %338 = vst.msk [vmem:[%s660_s4 + $0x4c] sm:$0xf] %vm318_vm1, %v317_v26 }

</bundles_post_ra>
